<compile_context>
chip_gen: v7x
topology: tpu7x:2x2x1
jax: 0.10.0
libtpu: 0.0.40
codegen_flags: <defaults>
</compile_context>

<pallas_src>
import jax
import jax.numpy as jnp
from jax.experimental import pallas as pl
from jax.experimental.pallas import tpu as pltpu


def edge_block_kernel(edges_ref, msgs_ref, ctxt_ref,
                      ln_we_ref, ln_be_ref, ln_wm_ref, ln_bm_ref,
                      w1e_ref, w1m_ref, w1c_ref, b1_ref,
                      w2_ref, b2_ref,
                      out_ref):
    """Fused LN -> MLP(ctxt) -> LeakyReLU -> Linear -> +residual, (features, batch) layout."""
    e = edges_ref[...].astype(jnp.float32)        # (E_DIM, Bt)   original edges (also residual)
    m = msgs_ref[...].astype(jnp.float32)         # (M_DIM, Bt)   send/recv messages
    c = ctxt_ref[...].astype(jnp.float32)         # (C_DIM, Bt)   per-edge conditional info

    # --- pre-LN over the (virtual) concat [edges, messages], eps=1e-5, affine ---
    d = e.shape[0] + m.shape[0]
    inv_d = 1.0 / d
    mean = (jnp.sum(e, axis=0, keepdims=True)
            + jnp.sum(m, axis=0, keepdims=True)) * inv_d          # (1, Bt)
    de = e - mean
    dm = m - mean
    var = (jnp.sum(de * de, axis=0, keepdims=True)
           + jnp.sum(dm * dm, axis=0, keepdims=True)) * inv_d     # biased, matches torch LN
    rstd = jax.lax.rsqrt(var + 1e-5)
    xe = de * rstd * ln_we_ref[...] + ln_be_ref[...]              # (E_DIM, Bt)
    xm = dm * rstd * ln_wm_ref[...] + ln_bm_ref[...]              # (M_DIM, Bt)

    # --- MLP: h = W1 @ [xe; xm; ctxt] + b1 with W1 pre-split (no in-kernel concat) ---
    h = (jnp.dot(w1e_ref[...], xe, preferred_element_type=jnp.float32)
         + jnp.dot(w1m_ref[...], xm, preferred_element_type=jnp.float32)
         + jnp.dot(w1c_ref[...], c, preferred_element_type=jnp.float32)
         + b1_ref[...])                                           # (HID, Bt)
    h = jnp.where(h > 0, h, 0.1 * h)                              # LeakyReLU(0.1)
    y = jnp.dot(w2_ref[...], h, preferred_element_type=jnp.float32) + b2_ref[...]  # (OUT, Bt)

    # --- additive residual with the original edges ---
    out_ref[...] = (y + e).astype(out_ref.dtype)


def edge_block_forward(edges, msgs, ctxt, params, *, b_tile=256):
    """EdgeBlock feature-update path. Layout plumbing (transpose/pad) is wrapper glue;
    LN + MLP + residual run inside the Pallas kernel on a lane-dense (D, N) layout."""
    n = edges.shape[0]
    e_dim, m_dim, c_dim = edges.shape[1], msgs.shape[1], ctxt.shape[1]
    out_dim = params["w2"].shape[0]

    n_pad = (-n) % b_tile

    def prep(x):  # (N, D) -> (D, N_padded), features on sublanes, edges on lanes
        if n_pad:
            x = jnp.pad(x, ((0, n_pad), (0, 0)))
        return x.T

    e_t, m_t, c_t = prep(edges), prep(msgs), prep(ctxt)
    n_padded = n + n_pad
    grid = (n_padded // b_tile,)

    def act_spec(d):          # streamed activation tiles, lane-dense along the batch axis
        return pl.BlockSpec((d, b_tile), lambda i: (0, i))

    def par_spec(shape):      # parameters: same block every step -> VMEM-resident
        return pl.BlockSpec(shape, lambda i: (0, 0))

    out_t = pl.pallas_call(
        edge_block_kernel,
        out_shape=jax.ShapeDtypeStruct((out_dim, n_padded), jnp.float32),
        grid=grid,
        in_specs=[
            act_spec(e_dim), act_spec(m_dim), act_spec(c_dim),
            par_spec(params["ln_w_e"].shape), par_spec(params["ln_b_e"].shape),
            par_spec(params["ln_w_m"].shape), par_spec(params["ln_b_m"].shape),
            par_spec(params["w1_e"].shape), par_spec(params["w1_m"].shape),
            par_spec(params["w1_c"].shape), par_spec(params["b1"].shape),
            par_spec(params["w2"].shape), par_spec(params["b2"].shape),
        ],
        out_specs=act_spec(out_dim),
        compiler_params=pltpu.CompilerParams(dimension_semantics=("parallel",)),
    )(e_t, m_t, c_t,
      params["ln_w_e"], params["ln_b_e"], params["ln_w_m"], params["ln_b_m"],
      params["w1_e"], params["w1_m"], params["w1_c"], params["b1"],
      params["w2"], params["b2"])

    return out_t.T[:n]        # back to (N_edges, out_dim)


def reference_forward(edges, msgs, ctxt, params):
    """Pure-JAX reference (standard (N, D) layout) for a correctness check."""
    x = jnp.concatenate([edges, msgs], axis=-1)
    mean = jnp.mean(x, axis=-1, keepdims=True)
    var = jnp.mean((x - mean) ** 2, axis=-1, keepdims=True)
    xn = (x - mean) / jnp.sqrt(var + 1e-5)
    ln_w = jnp.concatenate([params["ln_w_e"][:, 0], params["ln_w_m"][:, 0]])
    ln_b = jnp.concatenate([params["ln_b_e"][:, 0], params["ln_b_m"][:, 0]])
    xn = xn * ln_w + ln_b
    h_in = jnp.concatenate([xn, ctxt], axis=-1)
    w1 = jnp.concatenate([params["w1_e"], params["w1_m"], params["w1_c"]], axis=1)
    h = h_in @ w1.T + params["b1"][:, 0]
    h = jnp.where(h > 0, h, 0.1 * h)
    y = h @ params["w2"].T + params["b2"][:, 0]
    return y + edges


if __name__ == "__main__":
    # EdgeBlock(inpt_dim=[e=4, n=6, g=4], ctxt_dim=4, msg_type='sr', do_ln=True,
    #           use_net=True, rsdl_type='add', feat_kwargs={'outp_dim': 4})
    N_EDGES = 512          # number of active edges in the batched graph
    E_DIM = 4              # inpt_dim[0]  (== outp_dim -> 'add' residual active)
    N_DIM = 6              # inpt_dim[1]
    M_DIM = 2 * N_DIM      # msg_type='sr' -> send + recv node features per edge
    G_DIM, CTXT_DIM = 4, 4
    C_DIM = G_DIM + CTXT_DIM   # ctxt_from_mask([globs, ctxt]) broadcast per edge
    HIDDEN = 32
    OUT_DIM = 4

    key = jax.random.PRNGKey(0)
    k_e, k_m, k_c, k_w1, k_b1, k_w2, k_b2 = jax.random.split(key, 7)

    edges = jax.random.normal(k_e, (N_EDGES, E_DIM), dtype=jnp.float32)
    msgs = jax.random.normal(k_m, (N_EDGES, M_DIM), dtype=jnp.float32)
    ctxt = jax.random.normal(k_c, (N_EDGES, C_DIM), dtype=jnp.float32)

    w1_full = 0.1 * jax.random.normal(k_w1, (HIDDEN, E_DIM + M_DIM + C_DIM), dtype=jnp.float32)
    params = {
        # nn.LayerNorm default init (weight=1, bias=0), split into edge / message parts,
        # stored as (D, 1) columns for the (features, batch) layout.
        "ln_w_e": jnp.ones((E_DIM, 1), dtype=jnp.float32),
        "ln_b_e": jnp.zeros((E_DIM, 1), dtype=jnp.float32),
        "ln_w_m": jnp.ones((M_DIM, 1), dtype=jnp.float32),
        "ln_b_m": jnp.zeros((M_DIM, 1), dtype=jnp.float32),
        # MLP weights in (out, in) layout, W1 pre-split so no concat is needed anywhere.
        "w1_e": w1_full[:, :E_DIM],
        "w1_m": w1_full[:, E_DIM:E_DIM + M_DIM],
        "w1_c": w1_full[:, E_DIM + M_DIM:],
        "b1": 0.1 * jax.random.normal(k_b1, (HIDDEN, 1), dtype=jnp.float32),
        "w2": 0.1 * jax.random.normal(k_w2, (OUT_DIM, HIDDEN), dtype=jnp.float32),
        "b2": 0.1 * jax.random.normal(k_b2, (OUT_DIM, 1), dtype=jnp.float32),
    }

    out = edge_block_forward(edges, msgs, ctxt, params, b_tile=256)
    out = jax.block_until_ready(out)

    ref = reference_forward(edges, msgs, ctxt, params)
    assert out.shape == (N_EDGES, OUT_DIM)
    assert jnp.allclose(out, ref, atol=1e-4, rtol=1e-4), "Pallas kernel mismatch vs reference"

    # TODO(synk): message building (adjacency gather) and the attention pooling
    #             (aggr_via_sparse softmax/sum + decompress) are data-dependent sparse
    #             segment ops handled outside this kernel.
    print("KERNEL_OK")
</pallas_src>

<mosaic_0001>
module attributes {stable_mosaic.version = 11 : i64} {
  func.func @edge_block_kernel(%arg0: i32, %arg1: memref<4x256xf32, #tpu.memory_space<vmem>>, %arg2: memref<12x256xf32, #tpu.memory_space<vmem>>, %arg3: memref<8x256xf32, #tpu.memory_space<vmem>>, %arg4: memref<4x1xf32, #tpu.memory_space<vmem>>, %arg5: memref<4x1xf32, #tpu.memory_space<vmem>>, %arg6: memref<12x1xf32, #tpu.memory_space<vmem>>, %arg7: memref<12x1xf32, #tpu.memory_space<vmem>>, %arg8: memref<32x4xf32, #tpu.memory_space<vmem>>, %arg9: memref<32x12xf32, #tpu.memory_space<vmem>>, %arg10: memref<32x8xf32, #tpu.memory_space<vmem>>, %arg11: memref<32x1xf32, #tpu.memory_space<vmem>>, %arg12: memref<4x32xf32, #tpu.memory_space<vmem>>, %arg13: memref<4x1xf32, #tpu.memory_space<vmem>>, %arg14: memref<4x256xf32, #tpu.memory_space<vmem>>) attributes {dimension_semantics = [#tpu.dimension_semantics<parallel>], iteration_bounds = array<i64: 2>, scalar_prefetch = 0 : i64, scratch_operands = 0 : i64, tpu.core_type = #tpu.core_type<tc>, window_params = [{transform_indices = @transform_0, window_bounds = array<i64: 4, 256>}, {transform_indices = @transform_1, window_bounds = array<i64: 12, 256>}, {transform_indices = @transform_2, window_bounds = array<i64: 8, 256>}, {pipeline_mode = #tpu.pipeline_mode<synchronous>, transform_indices = @transform_3, window_bounds = array<i64: 4, 1>}, {pipeline_mode = #tpu.pipeline_mode<synchronous>, transform_indices = @transform_4, window_bounds = array<i64: 4, 1>}, {pipeline_mode = #tpu.pipeline_mode<synchronous>, transform_indices = @transform_5, window_bounds = array<i64: 12, 1>}, {pipeline_mode = #tpu.pipeline_mode<synchronous>, transform_indices = @transform_6, window_bounds = array<i64: 12, 1>}, {pipeline_mode = #tpu.pipeline_mode<synchronous>, transform_indices = @transform_7, window_bounds = array<i64: 32, 4>}, {pipeline_mode = #tpu.pipeline_mode<synchronous>, transform_indices = @transform_8, window_bounds = array<i64: 32, 12>}, {pipeline_mode = #tpu.pipeline_mode<synchronous>, transform_indices = @transform_9, window_bounds = array<i64: 32, 8>}, {pipeline_mode = #tpu.pipeline_mode<synchronous>, transform_indices = @transform_10, window_bounds = array<i64: 32, 1>}, {pipeline_mode = #tpu.pipeline_mode<synchronous>, transform_indices = @transform_11, window_bounds = array<i64: 4, 32>}, {pipeline_mode = #tpu.pipeline_mode<synchronous>, transform_indices = @transform_12, window_bounds = array<i64: 4, 1>}, {transform_indices = @transform_13, window_bounds = array<i64: 4, 256>}]} {
    %c0 = arith.constant 0 : index
    %c0_0 = arith.constant 0 : index
    %0 = vector.load %arg1[%c0, %c0_0] : memref<4x256xf32, #tpu.memory_space<vmem>>, vector<4x256xf32>
    %c0_1 = arith.constant 0 : index
    %c0_2 = arith.constant 0 : index
    %1 = vector.load %arg2[%c0_1, %c0_2] : memref<12x256xf32, #tpu.memory_space<vmem>>, vector<12x256xf32>
    %c0_3 = arith.constant 0 : index
    %c0_4 = arith.constant 0 : index
    %2 = vector.load %arg3[%c0_3, %c0_4] : memref<8x256xf32, #tpu.memory_space<vmem>>, vector<8x256xf32>
    %cst = arith.constant dense<0.000000e+00> : vector<256xf32>
    %3 = vector.multi_reduction <add>, %0, %cst [0] : vector<4x256xf32> to vector<256xf32>
    %4 = vector.shape_cast %3 : vector<256xf32> to vector<1x256xf32>
    %cst_5 = arith.constant dense<0.000000e+00> : vector<256xf32>
    %5 = vector.multi_reduction <add>, %1, %cst_5 [0] : vector<12x256xf32> to vector<256xf32>
    %6 = vector.shape_cast %5 : vector<256xf32> to vector<1x256xf32>
    %7 = arith.addf %4, %6 : vector<1x256xf32>
    %cst_6 = arith.constant 6.250000e-02 : f32
    %8 = vector.broadcast %cst_6 : f32 to vector<1x256xf32>
    %9 = arith.mulf %7, %8 : vector<1x256xf32>
    %10 = vector.broadcast %9 : vector<1x256xf32> to vector<4x256xf32>
    %11 = arith.subf %0, %10 : vector<4x256xf32>
    %12 = vector.broadcast %9 : vector<1x256xf32> to vector<12x256xf32>
    %13 = arith.subf %1, %12 : vector<12x256xf32>
    %14 = arith.mulf %11, %11 : vector<4x256xf32>
    %cst_7 = arith.constant dense<0.000000e+00> : vector<256xf32>
    %15 = vector.multi_reduction <add>, %14, %cst_7 [0] : vector<4x256xf32> to vector<256xf32>
    %16 = vector.shape_cast %15 : vector<256xf32> to vector<1x256xf32>
    %17 = arith.mulf %13, %13 : vector<12x256xf32>
    %cst_8 = arith.constant dense<0.000000e+00> : vector<256xf32>
    %18 = vector.multi_reduction <add>, %17, %cst_8 [0] : vector<12x256xf32> to vector<256xf32>
    %19 = vector.shape_cast %18 : vector<256xf32> to vector<1x256xf32>
    %20 = arith.addf %16, %19 : vector<1x256xf32>
    %cst_9 = arith.constant 6.250000e-02 : f32
    %21 = vector.broadcast %cst_9 : f32 to vector<1x256xf32>
    %22 = arith.mulf %20, %21 : vector<1x256xf32>
    %cst_10 = arith.constant 9.99999974E-6 : f32
    %23 = vector.broadcast %cst_10 : f32 to vector<1x256xf32>
    %24 = arith.addf %22, %23 : vector<1x256xf32>
    %25 = math.rsqrt %24 : vector<1x256xf32>
    %26 = vector.broadcast %25 : vector<1x256xf32> to vector<4x256xf32>
    %27 = arith.mulf %11, %26 : vector<4x256xf32>
    %c0_11 = arith.constant 0 : index
    %c0_12 = arith.constant 0 : index
    %28 = vector.load %arg4[%c0_11, %c0_12] : memref<4x1xf32, #tpu.memory_space<vmem>>, vector<4x1xf32>
    %29 = vector.broadcast %28 : vector<4x1xf32> to vector<4x256xf32>
    %30 = arith.mulf %27, %29 : vector<4x256xf32>
    %c0_13 = arith.constant 0 : index
    %c0_14 = arith.constant 0 : index
    %31 = vector.load %arg5[%c0_13, %c0_14] : memref<4x1xf32, #tpu.memory_space<vmem>>, vector<4x1xf32>
    %32 = vector.broadcast %31 : vector<4x1xf32> to vector<4x256xf32>
    %33 = arith.addf %30, %32 : vector<4x256xf32>
    %34 = vector.broadcast %25 : vector<1x256xf32> to vector<12x256xf32>
    %35 = arith.mulf %13, %34 : vector<12x256xf32>
    %c0_15 = arith.constant 0 : index
    %c0_16 = arith.constant 0 : index
    %36 = vector.load %arg6[%c0_15, %c0_16] : memref<12x1xf32, #tpu.memory_space<vmem>>, vector<12x1xf32>
    %37 = vector.broadcast %36 : vector<12x1xf32> to vector<12x256xf32>
    %38 = arith.mulf %35, %37 : vector<12x256xf32>
    %c0_17 = arith.constant 0 : index
    %c0_18 = arith.constant 0 : index
    %39 = vector.load %arg7[%c0_17, %c0_18] : memref<12x1xf32, #tpu.memory_space<vmem>>, vector<12x1xf32>
    %40 = vector.broadcast %39 : vector<12x1xf32> to vector<12x256xf32>
    %41 = arith.addf %38, %40 : vector<12x256xf32>
    %c0_19 = arith.constant 0 : index
    %c0_20 = arith.constant 0 : index
    %42 = vector.load %arg8[%c0_19, %c0_20] : memref<32x4xf32, #tpu.memory_space<vmem>>, vector<32x4xf32>
    %cst_21 = arith.constant dense<0.000000e+00> : vector<32x256xf32>
    %43 = tpu.matmul %42, %33, %cst_21 {dimension_numbers = #tpu.dot_dimension_numbers<[1], [0], [0], [1], [0, 0, 1, 1], [], []>} : vector<32x4xf32>, vector<4x256xf32>, vector<32x256xf32> -> vector<32x256xf32>
    %c0_22 = arith.constant 0 : index
    %c0_23 = arith.constant 0 : index
    %44 = vector.load %arg9[%c0_22, %c0_23] : memref<32x12xf32, #tpu.memory_space<vmem>>, vector<32x12xf32>
    %cst_24 = arith.constant dense<0.000000e+00> : vector<32x256xf32>
    %45 = tpu.matmul %44, %41, %cst_24 {dimension_numbers = #tpu.dot_dimension_numbers<[1], [0], [0], [1], [0, 0, 1, 1], [], []>} : vector<32x12xf32>, vector<12x256xf32>, vector<32x256xf32> -> vector<32x256xf32>
    %46 = arith.addf %43, %45 : vector<32x256xf32>
    %c0_25 = arith.constant 0 : index
    %c0_26 = arith.constant 0 : index
    %47 = vector.load %arg10[%c0_25, %c0_26] : memref<32x8xf32, #tpu.memory_space<vmem>>, vector<32x8xf32>
    %cst_27 = arith.constant dense<0.000000e+00> : vector<32x256xf32>
    %48 = tpu.matmul %47, %2, %cst_27 {dimension_numbers = #tpu.dot_dimension_numbers<[1], [0], [0], [1], [0, 0, 1, 1], [], []>} : vector<32x8xf32>, vector<8x256xf32>, vector<32x256xf32> -> vector<32x256xf32>
    %49 = arith.addf %46, %48 : vector<32x256xf32>
    %c0_28 = arith.constant 0 : index
    %c0_29 = arith.constant 0 : index
    %50 = vector.load %arg11[%c0_28, %c0_29] : memref<32x1xf32, #tpu.memory_space<vmem>>, vector<32x1xf32>
    %51 = vector.broadcast %50 : vector<32x1xf32> to vector<32x256xf32>
    %52 = arith.addf %49, %51 : vector<32x256xf32>
    %cst_30 = arith.constant 0.000000e+00 : f32
    %53 = vector.broadcast %cst_30 : f32 to vector<32x256xf32>
    %54 = arith.cmpf ogt, %52, %53 : vector<32x256xf32>
    %cst_31 = arith.constant 1.000000e-01 : f32
    %55 = vector.broadcast %cst_31 : f32 to vector<32x256xf32>
    %56 = arith.mulf %55, %52 : vector<32x256xf32>
    %57 = arith.select %54, %52, %56 : vector<32x256xi1>, vector<32x256xf32>
    %c0_32 = arith.constant 0 : index
    %c0_33 = arith.constant 0 : index
    %58 = vector.load %arg12[%c0_32, %c0_33] : memref<4x32xf32, #tpu.memory_space<vmem>>, vector<4x32xf32>
    %cst_34 = arith.constant dense<0.000000e+00> : vector<4x256xf32>
    %59 = tpu.matmul %58, %57, %cst_34 {dimension_numbers = #tpu.dot_dimension_numbers<[1], [0], [0], [1], [0, 0, 1, 1], [], []>} : vector<4x32xf32>, vector<32x256xf32>, vector<4x256xf32> -> vector<4x256xf32>
    %c0_35 = arith.constant 0 : index
    %c0_36 = arith.constant 0 : index
    %60 = vector.load %arg13[%c0_35, %c0_36] : memref<4x1xf32, #tpu.memory_space<vmem>>, vector<4x1xf32>
    %61 = vector.broadcast %60 : vector<4x1xf32> to vector<4x256xf32>
    %62 = arith.addf %59, %61 : vector<4x256xf32>
    %63 = arith.addf %62, %0 : vector<4x256xf32>
    %c0_37 = arith.constant 0 : index
    %c0_38 = arith.constant 0 : index
    %64 = vector.load %arg14[%c0_37, %c0_38] : memref<4x256xf32, #tpu.memory_space<vmem>>, vector<4x256xf32>
    tpu.vector_store %arg14[%c0_37, %c0_38], %63 {strides = array<i32>} : memref<4x256xf32, #tpu.memory_space<vmem>>, vector<4x256xf32>,
    return
  }
  func.func @transform_0(%arg0: i32) -> (i32, i32) {
    %c0_i32 = arith.constant 0 : i32
    %c0_i32_0 = arith.constant 0 : i32
    return %c0_i32, %arg0 : i32, i32
  }
  func.func @transform_1(%arg0: i32) -> (i32, i32) {
    %c0_i32 = arith.constant 0 : i32
    %c0_i32_0 = arith.constant 0 : i32
    return %c0_i32, %arg0 : i32, i32
  }
  func.func @transform_2(%arg0: i32) -> (i32, i32) {
    %c0_i32 = arith.constant 0 : i32
    %c0_i32_0 = arith.constant 0 : i32
    return %c0_i32, %arg0 : i32, i32
  }
  func.func @transform_3(%arg0: i32) -> (i32, i32) {
    %c0_i32 = arith.constant 0 : i32
    %c0_i32_0 = arith.constant 0 : i32
    %c0_i32_1 = arith.constant 0 : i32
    return %c0_i32, %c0_i32_0 : i32, i32
  }
  func.func @transform_4(%arg0: i32) -> (i32, i32) {
    %c0_i32 = arith.constant 0 : i32
    %c0_i32_0 = arith.constant 0 : i32
    %c0_i32_1 = arith.constant 0 : i32
    return %c0_i32, %c0_i32_0 : i32, i32
  }
  func.func @transform_5(%arg0: i32) -> (i32, i32) {
    %c0_i32 = arith.constant 0 : i32
    %c0_i32_0 = arith.constant 0 : i32
    %c0_i32_1 = arith.constant 0 : i32
    return %c0_i32, %c0_i32_0 : i32, i32
  }
  func.func @transform_6(%arg0: i32) -> (i32, i32) {
    %c0_i32 = arith.constant 0 : i32
    %c0_i32_0 = arith.constant 0 : i32
    %c0_i32_1 = arith.constant 0 : i32
    return %c0_i32, %c0_i32_0 : i32, i32
  }
  func.func @transform_7(%arg0: i32) -> (i32, i32) {
    %c0_i32 = arith.constant 0 : i32
    %c0_i32_0 = arith.constant 0 : i32
    %c0_i32_1 = arith.constant 0 : i32
    return %c0_i32, %c0_i32_0 : i32, i32
  }
  func.func @transform_8(%arg0: i32) -> (i32, i32) {
    %c0_i32 = arith.constant 0 : i32
    %c0_i32_0 = arith.constant 0 : i32
    %c0_i32_1 = arith.constant 0 : i32
    return %c0_i32, %c0_i32_0 : i32, i32
  }
  func.func @transform_9(%arg0: i32) -> (i32, i32) {
    %c0_i32 = arith.constant 0 : i32
    %c0_i32_0 = arith.constant 0 : i32
    %c0_i32_1 = arith.constant 0 : i32
    return %c0_i32, %c0_i32_0 : i32, i32
  }
  func.func @transform_10(%arg0: i32) -> (i32, i32) {
    %c0_i32 = arith.constant 0 : i32
    %c0_i32_0 = arith.constant 0 : i32
    %c0_i32_1 = arith.constant 0 : i32
    return %c0_i32, %c0_i32_0 : i32, i32
  }
  func.func @transform_11(%arg0: i32) -> (i32, i32) {
    %c0_i32 = arith.constant 0 : i32
    %c0_i32_0 = arith.constant 0 : i32
    %c0_i32_1 = arith.constant 0 : i32
    return %c0_i32, %c0_i32_0 : i32, i32
  }
  func.func @transform_12(%arg0: i32) -> (i32, i32) {
    %c0_i32 = arith.constant 0 : i32
    %c0_i32_0 = arith.constant 0 : i32
    %c0_i32_1 = arith.constant 0 : i32
    return %c0_i32, %c0_i32_0 : i32, i32
  }
  func.func @transform_13(%arg0: i32) -> (i32, i32) {
    %c0_i32 = arith.constant 0 : i32
    %c0_i32_0 = arith.constant 0 : i32
    return %c0_i32, %arg0 : i32, i32
  }
}

</mosaic_0001>

<bundles_post_ra>
// kernel: tpu_custom_call.1
= control target key start
LH: loop header
LB: loop body
LE: loop exit
PB: predicated region body
PF: predicated region fallthrough
CT: control target
= control target key end

     0   :  { %s1769_s0 = inlined_call_operand.vmem [shape: f32[4,512], index: 0, kind: input, shape index: {}]   ;;  %s1770_s1 = inlined_call_operand.vmem [shape: f32[12,512], index: 1, kind: input, shape index: {}]   ;;  %s1771_s2 = inlined_call_operand.vmem [shape: f32[8,512], index: 2, kind: input, shape index: {}]   ;;  %s1772_s3 = inlined_call_operand.vmem [shape: f32[4,1], index: 3, kind: input, shape index: {}]   ;;  %s1773_s4 = inlined_call_operand.vmem [shape: f32[4,1], index: 4, kind: input, shape index: {}]   ;;  %s1774_s5 = inlined_call_operand.vmem [shape: f32[12,1], index: 5, kind: input, shape index: {}]   ;;  %s1775_s6 = inlined_call_operand.vmem [shape: f32[12,1], index: 6, kind: input, shape index: {}]   ;;  %s1776_s7 = inlined_call_operand.vmem [shape: f32[32,4], index: 7, kind: input, shape index: {}]   ;;  %s1777_s8 = inlined_call_operand.vmem [shape: f32[32,12], index: 8, kind: input, shape index: {}]   ;;  %s1778_s9 = inlined_call_operand.vmem [shape: f32[32,8], index: 9, kind: input, shape index: {}]   ;;  %s1779_s10 = inlined_call_operand.vmem [shape: f32[32,1], index: 10, kind: input, shape index: {}]   ;;  %s1780_s11 = inlined_call_operand.vmem [shape: f32[4,32], index: 11, kind: input, shape index: {}]   ;;  %s1781_s12 = inlined_call_operand.vmem [shape: f32[4,1], index: 12, kind: input, shape index: {}]   ;;  %s1782_s13 = inlined_call_operand.hbm [shape: f32[4,512], index: 13, kind: output, shape index: {}]  }
   0x1   :  { %1784 = sst [smem:[#allocation8_spill]] %s1770_s1 }
   0x2   :  { %1785 = sst [smem:[#allocation9_spill]] %s1772_s3 }
   0x3   :  { %1786 = sst [smem:[#allocation10_spill]] %s1773_s4 }
   0x4   :  { %1787 = sst [smem:[#allocation11_spill]] %s1774_s5 }
   0x5   :  { %1788 = sst [smem:[#allocation12_spill]] %s1775_s6 }
   0x6   :  { %18 = vsyncpa [#allocation4], 0 }
   0x7   :  { %20 = vsyncpa [#allocation4 + $0x1], 0  ;;  %s1523_s25 = smov 0   ;;  %s1525_s26 = smov 0  }
   0x8   :  { %s1527_s27 = smov 0   ;;  %s1529_s28 = smov 0  }
   0x9 LB: > { %1789 = sst [smem:[#allocation6_spill]] %s1442_s27  ;;  %s1544_s29 = sadd.s32 4294967295, %s1446_s28   ;;  %s1446_s28 = sphi %s1529_s28, %s1802_s28   ;;  %s1442_s27 = sphi %s1527_s27, %s1799_s27   ;;  %s1438_s26 = sphi %s1525_s26, %s1801_s26   ;;  %s1434_s25 = sphi %s1523_s25, %s1800_s25  }
   0xa   : > { %s1267_s30 = sadd.s32 4294967294, %s1446_s28   ;;  %s1548_s14 = sadd.s32 1, %s1446_s28  }
   0xb   : > { %s59_s15 = sadd.s32 1, %s1442_s27  ;;  %s56_s16 = ssub.s32 %s1446_s28, %s1548_s14 }
   0xc   : > { %p66_p0 = scmp.ne.s32.totalorder %s1442_s27, %s1438_s26  ;;  %p57_p1 = scmp.eq.s32.totalorder %s56_s16, 0 }
   0xd   : > { %p67_p2 = scmp.eq.s32.totalorder %s1446_s28, 0  ;;  %p332_p3 = scmp.eq.s32.totalorder %s1544_s29, 1 }
   0xe   : > { %p337_p4 = scmp.ne.s32.totalorder %s1438_s26, %s1434_s25  ;;  %p338_p7 = scmp.eq.s32.totalorder %s1267_s30, 1 }
   0xf   : > { %s1560_s17 = scalar_select %p57_p1, %s1442_s27, %s59_s15  }
  0x10   : > { %p68_p5 = por %p67_p2, %p66_p0  ;;  %p1562_p6 = por %p332_p3, %p66_p0 }
  0x11   : > { %1790 = sst [smem:[#allocation7_spill]] %s1560_s17  ;;  %p1566_p8 = por %p338_p7, %p337_p4 }
  0x12   : > { %p1269_p9 = scmp.ge.s32.totalorder %s1446_s28, 2 }
  0x14   : > { %384 = sbr.rel (%p1269_p9) target bundleno = 39 (0x27), region = 56 }
  0x1b   : > { %396 = sbr.rel (!%p68_p5) target bundleno = 39 (0x27), region = 64  ;;  %s398_s20 = sand.u32 (%p68_p5), 1, %s1442_s27  }
  0x1c   : > { %s1302_s21 = sshll.u32 (%p68_p5), %s1446_s28, 4  ;;  %s1270_s22 = sshll.u32 (%p68_p5), %s398_s20, 5 }
  0x1d   : > { %s1793_s1 = sld [smem:[#allocation8_spill]] (%p68_p5)  ;;  %s400_s30 = scalar_lea.vmem (%p68_p5), [#allocation2], %s1270_s22 }
  0x23   : > { %s403_s15 = scalar_lea.vmem %s1793_s1, %s1302_s21 }
  0x24   : > { %v416_v0 = vld [vmem:[%s403_s15] sm:$0xff]  ;;  %v418_v1 = vld [vmem:[%s403_s15 + $0x8] sm:$0xff] }
  0x25   : > { %v420_v2 = vld [vmem:[%s403_s15 + $0x20] sm:$0xff]  ;;  %417 = vst [vmem:[%s400_s30] sm:$0xff] %v416_v0  ;;  %419 = vst [vmem:[%s400_s30 + $0x8] sm:$0xff] %v418_v1  ;;  %v422_v3 = vld [vmem:[%s403_s15 + $0x28] sm:$0xff] }
  0x26   : > { %421 = vst [vmem:[%s400_s30 + $0x10] sm:$0xff] %v420_v2  ;;  %423 = vst [vmem:[%s400_s30 + $0x18] sm:$0xff] %v422_v3 }
  0x27 PF: > { %p1273_p10 = scmp.ge.s32.totalorder %s1446_s28, 1  ;;  %p437_p11 = scmp.lt.s32.totalorder %s1446_s28, 3 }
  0x29   : > { %p438_p12 = pnand %p1273_p10, %p437_p11 }
  0x2a   : > { %s1794_s5 = sld [smem:[#allocation11_spill]] (!%p438_p12)  ;;  %s1795_s3 = sld [smem:[#allocation9_spill]] (!%p438_p12)  ;;  %v1448_v6 = vmov (!%p438_p12), 0   ;;  %v1019_v11 = vld [vmem:[%s1779_s10 + $0x8] sm:$0xff] (!%p438_p12)  ;;  %v1018_v12 = vld [vmem:[%s1779_s10] sm:$0xff] (!%p438_p12)  ;;  %v1021_v13 = vld [vmem:[%s1779_s10 + $0x18] sm:$0xff] (!%p438_p12) }
  0x2b   : > { %441 = sbr.rel (%p438_p12) target bundleno = 677 (0x2a5), region = 91  ;;  %1378 = vset.pattern.permute.xlu1 (!%p438_p12), %v1448_v6  ;;  %1377 = vset.pattern.permute.xlu0 (!%p438_p12), %v1448_v6  ;;  %s1276_s23 = sshll.u32 (!%p438_p12), %s1544_s29, 1  ;;  %v1020_v14 = vld [vmem:[%s1779_s10 + $0x10] sm:$0xff] (!%p438_p12)  ;;  %v1449_v15 = vmov (!%p438_p12), 0.0   ;;  %vm521_vm0 = vcmask (!%p438_p12), 1043456   ;;  %vm1451_vm1 = vmmov (!%p438_p12), 1  }
  0x2c   : > { %s1796_s4 = sld [smem:[#allocation10_spill]] (!%p438_p12)  ;;  %p498_p13 = scmp.lt.s32.totalorder (!%p438_p12), %s1276_s23, 3  ;;  %879 = vmatprep.mubr.f32.mxu0 (!%p438_p12), %v1449_v15  ;;  %771 = vmatprep.mubr.f32.mxu1 (!%p438_p12), %v1449_v15  ;;  %v1075_v19 = vld [vmem:[%s1781_s12] sm:$0xf] (!%p438_p12)  ;;  %vm1305_vm2 = vmpackc.low (!%p438_p12), %vm521_vm0, %vm1451_vm1  ;;  %vm798_vm3 = vcmask (!%p438_p12), 31744   ;;  %vm688_vm4 = vcmask (!%p438_p12), 97280  }
  0x2d   : > { %s1797_s6 = sld [smem:[#allocation12_spill]] (!%p438_p12)  ;;  %s1602_s24 = sand.u32 (!%p438_p12), 1, %s1438_s26   ;;  %vm908_vm5 = vcmask (!%p438_p12), 64512   ;;  %vm1081_vm14 = vcmask (!%p438_p12), 261120  }
  0x2e   : > { %s1274_s1 = sshll.u32 (!%p438_p12), %s1602_s24, 5  ;;  %s1275_s17 = sshll.u32 (!%p438_p12), %s1602_s24, 3 }
  0x30   : > { %v648_v4 = vld [vmem:[%s1794_s5] sm:$0xff] (!%p438_p12)  ;;  %v649_v7 = vld [vmem:[%s1794_s5 + $0x8] sm:$0xf] (!%p438_p12) }
  0x31   : > { %v616_v5 = vld [vmem:[%s1795_s3] sm:$0xf] (!%p438_p12)  ;;  %652 = vperm.xlu1 (!%p438_p12), %1378, %v648_v4   ;;  %s446_s3 = scalar_lea.vmem (!%p438_p12), [#allocation2], %s1274_s1 }
  0x32   : > { %619 = vperm.xlu0 %1377, %v616_v5   ;;  %v630_v8 = vld [vmem:[%s1796_s4] sm:$0xf]  ;;  %s1804_s23 = smov (!%p498_p13, %s1276_s23), 3  ;;  %v514_v17 = vld [vmem:[%s446_s3 + $0x10] sm:$0xf]  ;;  %v513_v21 = vld [vmem:[%s446_s3 + $0x8] sm:$0xff] }
  0x33   : > { %v665_v9 = vld [vmem:[%s1797_s6 + $0x8] sm:$0xf]  ;;  %v664_v10 = vld [vmem:[%s1797_s6] sm:$0xff]  ;;  %s1277_s15 = sshll.u32 %s1804_s23, 2  ;;  %v515_v18 = vld [vmem:[%s446_s3 + $0x18] sm:$0xf] }
  0x34   : > { %s501_s21 = scalar_lea.vmem %s1769_s0, %s1277_s15  ;;  %v512_v20 = vld [vmem:[%s446_s3] sm:$0xff]  ;;  %v536_v23 = vsel %vm521_vm0, %v514_v17, 0.0  ;;  %v544_v24 = vsel %vm521_vm0, %v515_v18, 0.0  ;;  %s1279_s6 = sshll.u32 %s1804_s23, 3 }
  0x35   : > { %657 = vperm.xlu1 %1378, %v649_v7   ;;  %v1623_v16 = vld [vmem:[%s501_s21] sm:$0xff]  ;;  %v537_v25 = vadd.f32 %v536_v23, %v512_v20  ;;  %v545_v26 = vadd.f32 %v544_v24, %v513_v21  ;;  %s508_s1 = scalar_lea.vmem %s1771_s2, %s1279_s6  ;;  %s496_s15 = scalar_lea.vmem [#allocation3], %s1275_s17 }
  0x36   : > { %633 = vperm.xlu0 %1377, %v630_v8   ;;  %v1630_v22 = vcombine.high %v1623_v16, %v1623_v16  ;;  %v522_v27 = vsel %vm521_vm0, %v1623_v16, 0.0  ;;  %s1178_s30 = sshll.u32 %s496_s15, 4  ;;  %s1164_s21 = scalar_lea.sflag [#allocation4], %s1602_s24  ;;  %s1727_s30 = int_to_ptr.vmem [resolvable:$true] %s1178_s30 }
  0x37   : > { %v523_v29 = vrot.slane %v522_v27, 4  ;;  %v538_v31 = vrot.slane %v537_v25, 4  ;;  %v546_v32 = vrot.slane %v545_v26, 4  ;;  %s1384_s22 = scalar_lea.vmem %s1727_s30, 128 }
  0x38   : > { %v529_v28 = vsel %vm521_vm0, %v1630_v22, 0.0  ;;  %p1385_p0 = scmp.ne.s32.totalorder %s1727_s30, %s1384_s22 }
  0x39   : > { %673 = vperm.xlu1 %1378, %v665_v9   ;;  %v530_v30 = vrot.slane %v529_v28, 4  ;;  %v524_v33 = vadd.f32 %v523_v29, %v522_v27  ;;  %v539_v35 = vadd.f32 %v538_v31, %v537_v25  ;;  %v547_v36 = vadd.f32 %v546_v32, %v545_v26 }
  0x3a   : > { %668 = vperm.xlu0 %1377, %v664_v10   ;;  %p1386_p1 = pnand %p1385_p0, %p1562_p6 }
  0x3b   : > { %v531_v34 = vadd.f32 %v530_v30, %v529_v28  ;;  %v525_v37 = vrot.slane %v524_v33, 2  ;;  %v540_v39 = vrot.slane %v539_v35, 2  ;;  %v548_v40 = vrot.slane %v547_v36, 2 }
  0x3c   : > { %p1387_p2 = pneg %p1386_p1 }
  0x3d   : > { %1029 = vperm.xlu1 %1378, %v1019_v11   ;;  %v532_v38 = vrot.slane %v531_v34, 2  ;;  %v526_v41 = vadd.f32 %v525_v37, %v524_v33  ;;  %v541_v43 = vadd.f32 %v540_v39, %v539_v35  ;;  %v549_v44 = vadd.f32 %v548_v40, %v547_v36 }
  0x3e   : > { %1024 = vperm.xlu0 %1377, %v1018_v12  }
  0x3f   : > { %v533_v42 = vadd.f32 %v532_v38, %v531_v34  ;;  %v527_v45 = vrot.slane %v526_v41, 1  ;;  %v542_v47 = vrot.slane %v541_v43, 1  ;;  %v550_v48 = vrot.slane %v549_v44, 1 }
  0x41   : > { %1039 = vperm.xlu1 %1378, %v1021_v13   ;;  %v534_v46 = vrot.slane %v533_v42, 1  ;;  %v528_v49 = vadd.f32 %v527_v45, %v526_v41  ;;  %v543_v51 = vadd.f32 %v542_v47, %v541_v43  ;;  %v551_v52 = vadd.f32 %v550_v48, %v549_v44 }
  0x42   : > { %1034 = vperm.xlu0 %1377, %v1020_v14   ;;  %v1450_v44 = vmov 839922192  }
  0x43   : > { %v535_v50 = vadd.f32 %v534_v46, %v533_v42  ;;  %v552_v53 = vadd.f32 %v543_v51, %v528_v49  ;;  %v622_v45 = vunpack.c.l.s4 %v1450_v44  ;;  %v624_v46 = vlaneseq }
  0x45   : > { %v553_v54 = vadd.f32 %v551_v52, %v535_v50  ;;  %v554_v55 = vmul.f32 0.0625, %v552_v53  ;;  %v623_v48 = vunpack.c.0.s8 %v622_v45  ;;  %v625_v49 = vshrl.u32 %v624_v46, 7 }
  0x46   : > { %1078 = vperm.xlu0 %1377, %v1075_v19  }
  0x47   : > { %v555_v56 = vmul.f32 0.0625, %v553_v54  ;;  %v1638_v58 = vsub.f32 %v514_v17, %v554_v55  ;;  %v561_v61 = vsub.f32 %v512_v20, %v554_v55  ;;  %v626_v51 = vsub.s32 %v623_v48, %v625_v49 }
  0x49   : > { %v558_v57 = vcombine.low %v554_v55, %v555_v56  ;;  %v1641_v60 = vsub.f32 %v515_v18, %v555_v56  ;;  %v562_v62 = vsub.f32 %v513_v21, %v555_v56  ;;  %v585_v63 = vmul.f32 %v1638_v58, %v1638_v58 }
  0x4a   : > { %v583_v2 = vmul.f32 %v561_v61, %v561_v61 }
  0x4b   : > { %v560_v59 = vsub.f32 %v1623_v16, %v558_v57  ;;  %v586_v1 = vmul.f32 %v1641_v60, %v1641_v60  ;;  %v584_v3 = vmul.f32 %v562_v62, %v562_v62  ;;  %v587_v4 = vsel %vm521_vm0, %v585_v63, 0.0 }
  0x4c   : > { %v588_v7 = vadd.f32 %v587_v4, %v583_v2 }
  0x4d   : > { %v565_v0 = vmul.f32 %v560_v59, %v560_v59  ;;  %v595_v6 = vsel %vm521_vm0, %v586_v1, 0.0 }
  0x4e   : > { %v596_v9 = vadd.f32 %v595_v6, %v584_v3  ;;  %v589_v12 = vrot.slane %v588_v7, 4 }
  0x4f   : > { %v567_v5 = vcombine.high %v565_v0, %v565_v0  ;;  %v569_v8 = vsel %vm521_vm0, %v565_v0, 0.0 }
  0x50   : > { %v570_v11 = vrot.slane %v569_v8, 4  ;;  %v597_v14 = vrot.slane %v596_v9, 4  ;;  %v590_v18 = vadd.f32 %v589_v12, %v588_v7 }
  0x51   : > { %v576_v10 = vsel %vm521_vm0, %v567_v5, 0.0 }
  0x52   : > { %v577_v13 = vrot.slane %v576_v10, 4  ;;  %v571_v17 = vadd.f32 %v570_v11, %v569_v8  ;;  %v598_v20 = vadd.f32 %v597_v14, %v596_v9  ;;  %v591_v23 = vrot.slane %v590_v18, 2 }
  0x54   : > { %v578_v19 = vadd.f32 %v577_v13, %v576_v10  ;;  %v572_v21 = vrot.slane %v571_v17, 2  ;;  %v599_v25 = vrot.slane %v598_v20, 2  ;;  %v592_v27 = vadd.f32 %v591_v23, %v590_v18  ;;  %v517_v18 = vld [vmem:[%s508_s1 + $0x8] sm:$0xff] }
  0x55   : > { %v685_v23 = vld [vmem:[%s1777_s8 + $0x8] sm:$0xff] }
  0x56   : > { %v579_v24 = vrot.slane %v578_v19, 2  ;;  %v573_v26 = vadd.f32 %v572_v21, %v571_v17  ;;  %v600_v29 = vadd.f32 %v599_v25, %v598_v20  ;;  %v593_v31 = vrot.slane %v592_v27, 1  ;;  %v680_v17 = vld [vmem:[%s1776_s7] sm:$0xff]  ;;  %v681_v21 = vld [vmem:[%s1776_s7 + $0x8] sm:$0xff]  ;;  %v686_v25 = vld [vmem:[%s1777_s8 + $0x10] sm:$0xff] }
  0x57   : > { %v684_v20 = vld [vmem:[%s1777_s8] sm:$0xff] }
  0x58   : > { %v580_v28 = vadd.f32 %v579_v24, %v578_v19  ;;  %v574_v30 = vrot.slane %v573_v26, 1  ;;  %v601_v33 = vrot.slane %v600_v29, 1  ;;  %v594_v35 = vadd.f32 %v593_v31, %v592_v27  ;;  %v516_v19 = vld [vmem:[%s508_s1] sm:$0xff]  ;;  %v682_v24 = vld [vmem:[%s1776_s7 + $0x10] sm:$0xff]  ;;  %v687_v27 = vld [vmem:[%s1777_s8 + $0x18] sm:$0xff]  ;;  %s1303_s1 = sshll.u32 %s1544_s29, 7 }
  0x59   : > { %v907_v31 = vld [vmem:[%s1778_s9 + $0x18] sm:$0xff]  ;;  %s1725_s20 = scalar_lea.hbm %s1782_s13, %s1303_s1  ;;  %s1452_s29 = smov [#allocation3]  }
  0x5a   : > { %v581_v32 = vrot.slane %v580_v28, 1  ;;  %v575_v34 = vadd.f32 %v574_v30, %v573_v26  ;;  %v602_v37 = vadd.f32 %v601_v33, %v600_v29  ;;  %v683_v26 = vld [vmem:[%s1776_s7 + $0x18] sm:$0xff]  ;;  %v905_v29 = vld [vmem:[%s1778_s9 + $0x8] sm:$0xff]  ;;  %v906_v30 = vld [vmem:[%s1778_s9 + $0x10] sm:$0xff]  ;;  %s1388_s3 = sshll.u32 %s1452_s29, 4  ;;  %s1389_s3 = int_to_ptr.vmem [resolvable:$false] %s1388_s3 }
  0x5b   : > { %s1390_s4 = scalar_lea.vmem %s1389_s3, 256  ;;  %p1391_p3 = scmp.lt.s32.totalorder %s1727_s30, %s1389_s3 }
  0x5c   : > { %v582_v36 = vadd.f32 %v581_v32, %v580_v28  ;;  %v603_v38 = vadd.f32 %v594_v35, %v575_v34  ;;  %v904_v28 = vld [vmem:[%s1778_s9] sm:$0xff]  ;;  %p1392_p4 = scmp.lt.s32.totalorder %s1390_s4, %s1384_s22 }
  0x5e   : > { %v604_v39 = vadd.f32 %v602_v37, %v582_v36  ;;  %v605_v40 = vmul.f32 0.0625, %v603_v38  ;;  %p1393_p5 = por %p1392_p4, %p1391_p3 }
  0x60   : > { %v606_v41 = vmul.f32 0.0625, %v604_v39  ;;  %v607_v42 = vadd.f32 1e-05, %v605_v40  ;;  %p1394_p7 = pnand %p1393_p5, %p1387_p2 }
  0x62   : > { %v608_v43 = vadd.f32 1e-05, %v606_v41  ;;  %1380 = vrsqrt.f32 %v607_v42 }
  0x64   : > { %1382 = vrsqrt.f32 %v608_v43 }
  0x6c   : > { %v1381_v47 = vpop.eup %1380 }
  0x6d   : > { %v644_v54 = vmul.f32 %v1381_v47, %v561_v61  ;;  %v646_v0 = vmul.f32 %v1381_v47, %v1638_v58 }
  0x6e   : > { %v1383_v50 = vpop.eup %1382 }
  0x6f   : > { %v613_v52 = vcombine.low %v1381_v47, %v1383_v50  ;;  %v645_v55 = vmul.f32 %v1383_v50, %v562_v62  ;;  %v647_v1 = vmul.f32 %v1383_v50, %v1641_v60 }
  0x71   : > { %v615_v57 = vmul.f32 %v613_v52, %v560_v59 }
  0xb0   : > { %v653_v53 = vpop.permute.xlu1 %652 }
  0xb1   : > { %v620_v56 = vpop.permute.xlu0 %619  ;;  %v660_v2 = vmul.f32 %v653_v53, %v644_v54  ;;  %v661_v3 = vmul.f32 %v653_v53, %v645_v55 }
  0xb2   : > { %v627_v63 = vrot.slane %v620_v56, %v626_v51 }
  0xb4   : > { %v658_v4 = vpop.permute.xlu1 %657  ;;  %v629_v6 = vmul.f32 %v627_v63, %v615_v57 }
  0xb5   : > { %v634_v5 = vpop.permute.xlu0 %633  ;;  %v662_v7 = vmul.f32 %v658_v4, %v646_v0  ;;  %v663_v8 = vmul.f32 %v658_v4, %v647_v1 }
  0xb6   : > { %v641_v9 = vrot.slane %v634_v5, %v626_v51 }
  0xb8   : > { %v643_v10 = vadd.f32 %v641_v9, %v629_v6  ;;  %v674_v11 = vpop.permute.xlu1 %673 }
  0xb9   : > { %v669_v61 = vpop.permute.xlu0 %668  ;;  %v678_v62 = vadd.f32 %v674_v11, %v662_v7  ;;  %v679_v12 = vadd.f32 %v674_v11, %v663_v8 }
  0xba   : > { %v676_v59 = vadd.f32 %v669_v61, %v660_v2  ;;  %v677_v13 = vadd.f32 %v669_v61, %v661_v3  ;;  %v797_v58 = vcombine.high %v643_v10, %v643_v10 }
  0xbc   : > { %v1307_v60 = vpack.c.bf16 %v678_v62, %v676_v59  ;;  %v1304_v14 = vpack.c.bf16 %v679_v12, %v677_v13  ;;  %1286 = vmatprep.subr.msk.mxu0 %vm521_vm0, %v797_v58  ;;  %v1030_v49 = vpop.permute.xlu1 %1029 }
  0xbd   : > { %1287 = vmatpush1.msk.msra.mxu0 %vm521_vm0, %v643_v10  ;;  %v1025_v43 = vpop.permute.xlu0 %1024 }
  0xbe   : > { %1306 = vmatprep.subr.msk.bf16.mxu1 %vm1305_vm2, %v1304_v14  ;;  %1288 = vmatmul.mubr.msk.f32.vlgmr.msra.gmra.mrb[0].mxu0 %vm798_vm3, %v680_v17 }
  0xbf   : > { %1309 = vmatpush1.bf16.msk.msra.mxu1 %vm1305_vm2, %v1307_v60  ;;  %885 = vmatprep.mubr.f32.mxu0 %v1449_v15 }
  0xc0   : > { %921 = vmatprep.subr.mxu0 %v517_v18  ;;  %v1040_v12 = vpop.permute.xlu1 %1039 }
  0xc1   : > { %922 = vmatpush1.msra.mxu0 %v516_v19  ;;  %v1035_v0 = vpop.permute.xlu0 %1034 }
  0xc2   : > { %1282 = vmatmul.mubr.msk.f32.vlgmr.msra.gmra.mrb[0].mxu1 %vm688_vm4, %v684_v20  ;;  %1289 = vmatmul.mubr.msk.f32.gmra.mrb[2].mxu0 %vm798_vm3, %v681_v21 }
  0xc3   : > { %777 = vmatprep.mubr.f32.mxu1 %v1449_v15  ;;  %891 = vmatprep.mubr.f32.mxu0 %v1449_v15 }
  0xc6   : > { %1283 = vmatmul.mubr.msk.f32.gmra.mrb[2].mxu1 %vm688_vm4, %v685_v23  ;;  %1290 = vmatmul.mubr.msk.f32.gmra.mrb[4].mxu0 %vm798_vm3, %v682_v24 }
  0xc7   : > { %783 = vmatprep.mubr.f32.mxu1 %v1449_v15  ;;  %897 = vmatprep.mubr.f32.mxu0 %v1449_v15 }
  0xca   : > { %1284 = vmatmul.mubr.msk.f32.gmra.mrb[4].mxu1 %vm688_vm4, %v686_v25  ;;  %1291 = vmatmul.mubr.msk.f32.gmra.mrb[6].mxu0 %vm798_vm3, %v683_v26  ;;  %v1074_v26 = vld [vmem:[%s1780_s11] sm:$0xf] }
  0xcb   : > { %789 = vmatprep.mubr.f32.mxu1 %v1449_v15  ;;  %985 = vmatprep.mubr.f32.mxu0 %v1449_v15 }
  0xce   : > { %1285 = vmatmul.mubr.msk.f32.gmra.mrb[6].mxu1 %vm688_vm4, %v687_v27  ;;  %1292 = vmatmul.mubr.msk.f32.vlgmr.msra.gmra.mrb[0].mxu0 %vm908_vm5, %v904_v28  ;;  %v1079_v27 = vpop.permute.xlu0 %1078 }
  0xcf   : > { %1149 = vmatprep.mubr.f32.mxu1 %v1449_v15  ;;  %991 = vmatprep.mubr.f32.mxu0 %v1449_v15 }
  0xd2   : > { %1293 = vmatmul.mubr.msk.f32.gmra.mrb[2].mxu0 %vm908_vm5, %v905_v29 }
  0xd3   : > { %997 = vmatprep.mubr.f32.mxu0 %v1449_v15 }
  0xd6   : > { %1294 = vmatmul.mubr.msk.f32.gmra.mrb[4].mxu0 %vm908_vm5, %v906_v30 }
  0xd7   : > { %1003 = vmatprep.mubr.f32.mxu0 %v1449_v15 }
  0xda   : > { %1295 = vmatmul.mubr.msk.f32.gmra.mrb[6].mxu0 %vm908_vm5, %v907_v31 }
 0x195   : > { %v773_v32 = vpop.f32.mrb[0].mxu1 }
 0x196   : > { %v775_v33 = vpop.f32.mrb[1].mxu1 }
 0x199   : > { %v779_v34 = vpop.f32.mrb[2].mxu1 }
 0x19a   : > { %v781_v35 = vpop.f32.mrb[3].mxu1 }
 0x19d   : > { %v785_v36 = vpop.f32.mrb[4].mxu1 }
 0x19e   : > { %v787_v37 = vpop.f32.mrb[5].mxu1 }
 0x1a1   : > { %v791_v38 = vpop.f32.mrb[6].mxu1  ;;  %v987_v39 = vpop.f32.mrb[0].mxu0 }
 0x1a2   : > { %v793_v40 = vpop.f32.mrb[7].mxu1  ;;  %v1318_v41 = vadd.f32 %v987_v39, %v773_v32  ;;  %v989_v42 = vpop.f32.mrb[1].mxu0 }
 0x1a3   : > { %v1319_v44 = vadd.f32 %v989_v42, %v775_v33 }
 0x1a4   : > { %v1042_v45 = vadd.f32 %v1318_v41, %v1025_v43 }
 0x1a5   : > { %v1043_v15 = vadd.f32 %v1319_v44, %v1025_v43  ;;  %v993_v46 = vpop.f32.mrb[2].mxu0 }
 0x1a6   : > { %v1320_v47 = vadd.f32 %v993_v46, %v779_v34  ;;  %v995_v48 = vpop.f32.mrb[3].mxu0  ;;  %v1058_v51 = vmul.f32 0.1, %v1042_v45  ;;  %vm1050_vm6 = vcmp.gt.f32.partialorder %v1042_v45, 0.0 }
 0x1a7   : > { %v1321_v50 = vadd.f32 %v995_v48, %v781_v35  ;;  %v1059_v53 = vmul.f32 0.1, %v1043_v15  ;;  %vm1051_vm7 = vcmp.gt.f32.partialorder %v1043_v15, 0.0 }
 0x1a8   : > { %v1044_v52 = vadd.f32 %v1320_v47, %v1030_v49  ;;  %v1066_v3 = vsel %vm1050_vm6, %v1042_v45, %v1058_v51 }
 0x1a9   : > { %v1045_v54 = vadd.f32 %v1321_v50, %v1030_v49  ;;  %v999_v55 = vpop.f32.mrb[4].mxu0  ;;  %v1067_v8 = vsel %vm1051_vm7, %v1043_v15, %v1059_v53 }
 0x1aa   : > { %vm1052_vm8 = vcmp.gt.f32.partialorder %v1044_v52, 0.0  ;;  %v1060_v56 = vmul.f32 0.1, %v1044_v52  ;;  %v1322_v57 = vadd.f32 %v999_v55, %v785_v36  ;;  %v1001_v63 = vpop.f32.mrb[5].mxu0 }
 0x1ab   : > { %vm1053_vm9 = vcmp.gt.f32.partialorder %v1045_v54, 0.0  ;;  %v1061_v1 = vmul.f32 0.1, %v1045_v54  ;;  %v1323_v2 = vadd.f32 %v1001_v63, %v787_v37 }
 0x1ac   : > { %v1068_v4 = vsel %vm1052_vm8, %v1044_v52, %v1060_v56  ;;  %v1046_v5 = vadd.f32 %v1322_v57, %v1035_v0 }
 0x1ad   : > { %v1047_v6 = vadd.f32 %v1323_v2, %v1035_v0  ;;  %v1005_v7 = vpop.f32.mrb[6].mxu0  ;;  %v1069_v9 = vsel %vm1053_vm9, %v1045_v54, %v1061_v1  ;;  %v1312_v10 = vpack.c.bf16 %v1068_v4, %v1066_v3 }
 0x1ae   : > { %v1324_v11 = vadd.f32 %v1005_v7, %v791_v38  ;;  %v1007_v61 = vpop.f32.mrb[7].mxu0  ;;  %v1310_v62 = vpack.c.bf16 %v1069_v9, %v1067_v8  ;;  %v1062_v13 = vmul.f32 0.1, %v1046_v5  ;;  %vm1054_vm10 = vcmp.gt.f32.partialorder %v1046_v5, 0.0 }
 0x1af   : > { %v1325_v59 = vadd.f32 %v1007_v61, %v793_v40  ;;  %v1063_v60 = vmul.f32 0.1, %v1047_v6  ;;  %vm1055_vm11 = vcmp.gt.f32.partialorder %v1047_v6, 0.0 }
 0x1b0   : > { %v1048_v58 = vadd.f32 %v1324_v11, %v1040_v12  ;;  %1311 = vmatprep.subr.bf16.mxu1 %v1310_v62  ;;  %v1070_v19 = vsel %vm1054_vm10, %v1046_v5, %v1062_v13 }
 0x1b1   : > { %v1049_v14 = vadd.f32 %v1325_v59, %v1040_v12  ;;  %1313 = vmatpush1.bf16.msra.mxu1 %v1312_v10  ;;  %v1071_v21 = vsel %vm1055_vm11, %v1047_v6, %v1063_v60 }
 0x1b2   : > { %vm1056_vm12 = vcmp.gt.f32.partialorder %v1048_v58, 0.0  ;;  %v1064_v17 = vmul.f32 0.1, %v1048_v58 }
 0x1b3   : > { %vm1057_vm13 = vcmp.gt.f32.partialorder %v1049_v14, 0.0  ;;  %v1065_v18 = vmul.f32 0.1, %v1049_v14 }
 0x1b4   : > { %v1072_v20 = vsel %vm1056_vm12, %v1048_v58, %v1064_v17 }
 0x1b5   : > { %v1073_v23 = vsel %vm1057_vm13, %v1049_v14, %v1065_v18  ;;  %v1316_v24 = vpack.c.bf16 %v1072_v20, %v1070_v19 }
 0x1b6   : > { %v1314_v25 = vpack.c.bf16 %v1073_v23, %v1071_v21 }
 0x1b8   : > { %1315 = vmatprep.subr.bf16.mxu1 %v1314_v25 }
 0x1b9   : > { %1317 = vmatpush1.bf16.msra.mxu1 %v1316_v24 }
 0x1bc   : > { %1296 = vmatmul.mubr.msk.f32.vlgmr.msra.gmra.mrb[8].mxu1 %vm1081_vm14, %v1074_v26 }
 0x28f   : > { %v1151_v28 = vpop.f32.mrb[8].mxu1 }
 0x290   : > { %v1152_v29 = vadd.f32 %v1151_v28, %v1079_v27  ;;  %v1153_v30 = vpop.f32.mrb[9].mxu1 }
 0x291   : > { %v1154_v31 = vadd.f32 %v1153_v30, %v1079_v27 }
 0x292   : > { %v1156_v32 = vadd.f32 %v1152_v29, %v1623_v16 }
 0x293   : > { %v1157_v33 = vadd.f32 %v1154_v31, %v1630_v22 }
 0x295   : > { %v1160_v34 = vcombine.low %v1156_v32, %v1157_v33 }
 0x297   : > { %1162 = vst [vmem:[%s496_s15] sm:$0xff] %v1160_v34 }
 0x298   : > { %1397 = shalt.err (!%p1394_p7)
}
 0x299   : > { %s1398_s24 = scalar_lea.hbm %s1725_s20, 128  ;;  %s1402_s27 = scalar_lea.hbm %s1782_s13, 256 }
 0x29a   : > { %p1399_p10 = scmp.ne.s32.totalorder %s1725_s20, %s1398_s24  ;;  %p1403_p13 = scmp.lt.u32.totalorder %s1725_s20, %s1782_s13 }
 0x29b   : > { %p1404_p0 = scmp.lt.u32.totalorder %s1402_s27, %s1398_s24  ;;  %p1406_p2 = scmp.lt.u32.totalorder %s1398_s24, %s1725_s20 }
 0x29c   : > { %p1400_p11 = pnand %p1399_p10, %p1562_p6 }
 0x29d   : > { %p1405_p1 = por %p1404_p0, %p1403_p13 }
 0x29e   : > { %p1401_p12 = pneg %p1400_p11 }
 0x29f   : > { %p1407_p3 = por %p1406_p2, %p1405_p1 }
 0x2a1   : > { %p1408_p4 = pnand %p1407_p3, %p1401_p12 }
 0x2a3   : > { %1411 = shalt.err (!%p1408_p4)
}
 0x2a4   : > { %1334 = dma.vmem_to_hbm [thread:$0]  (%p1562_p6), %s1727_s30, 128, %s1725_s20, %s1164_s21  }
 0x2a5 PF: > { %s1190_s15 = sand.u32 1, %s1434_s25   ;;  %p1337_p5 = pnand %p1269_p9, %p1566_p8 }
 0x2a6   : > { %s1191_s23 = scalar_lea.sflag [#allocation4], %s1190_s15 }
 0x2a7   : > { %1429 = dma.done.wait (!%p1337_p5), %s1191_s23, 128  }
 0x2a8   : > { %1431 = vsyncadd (!%p1337_p5), %s1191_s23, 4294967168  ;;  %s1798_s16 = sld [smem:[#allocation6_spill]]  ;;  %s1799_s27 = sld [smem:[#allocation7_spill]] }
 0x2a9   : > { %p23_p7 = scmp.ge.s32.totalorder %s1548_s14, 4   ;;  %s1800_s25 = smov %s1438_s26 }
 0x2aa   : > { %s1802_s28 = smov %s1548_s14 }
 0x2ab   :  { %25 = sbr.rel (!%p23_p7) target bundleno = 9 (0x9), region = 141 }
 0x2ae   : > { %s1801_s26 = smov %s1798_s16 }
 0x2b2   :  { %1196 = vsyncpa [#allocation4], 1 }
 0x2b3   :  { %1198 = vsyncpa [#allocation4 + $0x1], 1 }

</bundles_post_ra>
